<compile_context>
chip_gen: v7x
topology: tpu7x:2x2x1
jax: 0.10.0
libtpu: 0.0.40
codegen_flags: <defaults>
</compile_context>

<pallas_src>
import functools

import jax
import jax.numpy as jnp
from jax import lax
from jax.experimental import pallas as pl
from jax.experimental.pallas import tpu as pltpu

NEG_INF = -1e9
M_INIT = -1e30          # finite init for the running max (avoids inf-inf NaNs)
LN_EPS = 1e-5
VMEM_LIMIT = 48 * 1024 * 1024


def _layernorm(x, g, b):
    # Keep all elementwise math in f32 (v5e VPU/EUP have no bf16).
    mu = jnp.mean(x, axis=-1, keepdims=True)
    var = jnp.mean((x - mu) ** 2, axis=-1, keepdims=True)
    return (x - mu) * lax.rsqrt(var + LN_EPS) * g + b


def _rep_spec(a):
    """Whole-array block, replicated across every grid axis (small weights)."""
    nd = a.ndim
    return pl.BlockSpec(a.shape, lambda *_: (0,) * nd)


def _tile(dim, target):
    return target if dim % target == 0 else dim


# ---------------------------------------------------------------------------
# Kernel A: LN1 + QKV projection, emits head-major Q/K/V (bf16).
# ---------------------------------------------------------------------------
def ln1_qkv_kernel(x_ref, g_ref, b_ref, wqkv_ref, bqkv_ref,
                   q_ref, k_ref, v_ref, *, num_heads):
    x = x_ref[0]                                       # (TQ, H) f32
    _, H = x.shape
    hd = H // num_heads
    xn = _layernorm(x, g_ref[...], b_ref[...])
    qkv = jnp.dot(xn.astype(jnp.bfloat16), wqkv_ref[...],
                  preferred_element_type=jnp.float32) + bqkv_ref[...]
    # Relayout to head-major once per token tile (instead of per attention step).
    for h in range(num_heads):
        q_ref[0, h] = qkv[:, 0 * H + h * hd:0 * H + (h + 1) * hd].astype(jnp.bfloat16)
        k_ref[0, h] = qkv[:, 1 * H + h * hd:1 * H + (h + 1) * hd].astype(jnp.bfloat16)
        v_ref[0, h] = qkv[:, 2 * H + h * hd:2 * H + (h + 1) * hd].astype(jnp.bfloat16)


# ---------------------------------------------------------------------------
# Kernel B: flash attention (online softmax over KV tiles) + out-proj + residual.
# ---------------------------------------------------------------------------
def flash_attn_kernel(q_ref, k_ref, v_ref, mask_ref, x_ref, wo_ref, bo_ref,
                      o_ref, m_sc, l_sc, acc_sc):
    qi = pl.program_id(1)
    ki = pl.program_id(2)
    nk = pl.num_programs(2)
    nh, tq, hd = q_ref.shape[1], q_ref.shape[2], q_ref.shape[3]
    tk = k_ref.shape[2]

    @pl.when(ki == 0)
    def _():
        m_sc[...] = jnp.full_like(m_sc, M_INIT)
        l_sc[...] = jnp.zeros_like(l_sc)
        acc_sc[...] = jnp.zeros_like(acc_sc)

    q_start = qi * tq
    k_start = ki * tk

    # Skip KV tiles entirely above the causal diagonal.
    @pl.when(k_start <= q_start + tq - 1)
    def _():
        q = q_ref[0]                                   # (nh, TQ, hd) bf16, pre-scaled
        k = k_ref[0]                                   # (nh, TK, hd) bf16
        v = v_ref[0]                                   # (nh, TK, hd) bf16
        s = jnp.einsum('hqd,hkd->hqk', q, k,
                       preferred_element_type=jnp.float32)        # (nh, TQ, TK) f32
        rows = q_start + lax.broadcasted_iota(jnp.int32, (tq, tk), 0)
        cols = k_start + lax.broadcasted_iota(jnp.int32, (tq, tk), 1)
        keymask = mask_ref[0] > 0.5                                # (1, TK)
        allowed = (cols <= rows) & keymask                         # (TQ, TK)
        s = jnp.where(allowed[None, :, :], s, NEG_INF)
        m_new = jnp.maximum(m_sc[...], jnp.max(s, axis=-1, keepdims=True))
        alpha = jnp.exp(m_sc[...] - m_new)
        p = jnp.exp(s - m_new)
        l_sc[...] = alpha * l_sc[...] + jnp.sum(p, axis=-1, keepdims=True)
        acc_sc[...] = alpha * acc_sc[...] + jnp.einsum(
            'hqk,hkd->hqd', p.astype(jnp.bfloat16), v,
            preferred_element_type=jnp.float32)
        m_sc[...] = m_new

    @pl.when(ki == nk - 1)
    def _():
        ctx = acc_sc[...] * pl.reciprocal(l_sc[...], approx=True)  # (nh, TQ, hd) f32
        ctx = ctx.astype(jnp.bfloat16)
        # Merge heads back to the interleaved (TQ, H) layout once per q-tile.
        ctx2 = jnp.concatenate([ctx[h] for h in range(nh)], axis=-1)
        attn = jnp.dot(ctx2, wo_ref[...],
                       preferred_element_type=jnp.float32) + bo_ref[...]
        o_ref[0] = x_ref[0] + attn


# ---------------------------------------------------------------------------
# Kernel C: LN2 + blocked MLP (reduction over FFN tiles) + residual (+ final LN).
# ---------------------------------------------------------------------------
def ln2_mlp_kernel(x1_ref, g2_ref, b2_ref, w1_ref, bias1_ref, w2_ref, bias2_ref,
                   gf_ref, bf_ref, o_ref, acc_ref, *, apply_final_ln):
    fi = pl.program_id(2)
    nf = pl.num_programs(2)

    @pl.when(fi == 0)
    def _():
        acc_ref[...] = jnp.zeros_like(acc_ref)

    x1 = x1_ref[0]                                     # (TQ, H) f32
    xn = _layernorm(x1, g2_ref[...], b2_ref[...])
    h1 = jnp.dot(xn.astype(jnp.bfloat16), w1_ref[...],
                 preferred_element_type=jnp.float32) + bias1_ref[...]
    # TODO(synk): switch to exact (erf) GELU if the reference checkpoint uses it.
    h1 = jax.nn.gelu(h1, approximate=True)
    acc_ref[...] += jnp.dot(h1.astype(jnp.bfloat16), w2_ref[...],
                            preferred_element_type=jnp.float32)

    @pl.when(fi == nf - 1)
    def _():
        y = x1 + acc_ref[...] + bias2_ref[...]
        if apply_final_ln:
            y = _layernorm(y, gf_ref[...], bf_ref[...])
        o_ref[0] = y


# ---------------------------------------------------------------------------
# pallas_call wrappers
# ---------------------------------------------------------------------------
def run_ln1_qkv(x, lp, *, num_heads, tq):
    B, S, H = x.shape
    hd = H // num_heads
    nq = S // tq
    qkv_shape = jax.ShapeDtypeStruct((B, num_heads, S, hd), jnp.bfloat16)
    qkv_spec = pl.BlockSpec((1, num_heads, tq, hd), lambda b, qi: (b, 0, qi, 0))
    return pl.pallas_call(
        functools.partial(ln1_qkv_kernel, num_heads=num_heads),
        out_shape=(qkv_shape, qkv_shape, qkv_shape),
        grid=(B, nq),
        in_specs=[pl.BlockSpec((1, tq, H), lambda b, qi: (b, qi, 0)),
                  _rep_spec(lp["ln1_g"]), _rep_spec(lp["ln1_b"]),
                  _rep_spec(lp["wqkv"]), _rep_spec(lp["bqkv"])],
        out_specs=(qkv_spec, qkv_spec, qkv_spec),
        compiler_params=pltpu.CompilerParams(
            dimension_semantics=("parallel", "parallel"),
            vmem_limit_bytes=VMEM_LIMIT),
    )(x, lp["ln1_g"], lp["ln1_b"], lp["wqkv"], lp["bqkv"])


def run_attention(x, q, k, v, mask3, lp, *, tq, tk):
    B, S, H = x.shape
    nh, hd = q.shape[1], q.shape[3]
    nq, nk = S // tq, S // tk
    return pl.pallas_call(
        flash_attn_kernel,
        out_shape=jax.ShapeDtypeStruct((B, S, H), jnp.float32),
        grid=(B, nq, nk),
        in_specs=[
            pl.BlockSpec((1, nh, tq, hd), lambda b, qi, ki: (b, 0, qi, 0)),   # q
            pl.BlockSpec((1, nh, tk, hd), lambda b, qi, ki: (b, 0, ki, 0)),   # k
            pl.BlockSpec((1, nh, tk, hd), lambda b, qi, ki: (b, 0, ki, 0)),   # v
            pl.BlockSpec((1, 1, tk), lambda b, qi, ki: (b, 0, ki)),           # key mask
            pl.BlockSpec((1, tq, H), lambda b, qi, ki: (b, qi, 0)),           # residual
            _rep_spec(lp["wo"]), _rep_spec(lp["bo"]),
        ],
        out_specs=pl.BlockSpec((1, tq, H), lambda b, qi, ki: (b, qi, 0)),
        scratch_shapes=[pltpu.VMEM((nh, tq, 1), jnp.float32),   # running max
                        pltpu.VMEM((nh, tq, 1), jnp.float32),   # running denom
                        pltpu.VMEM((nh, tq, hd), jnp.float32)], # ctx accumulator
        compiler_params=pltpu.CompilerParams(
            dimension_semantics=("parallel", "parallel", "arbitrary"),
            vmem_limit_bytes=VMEM_LIMIT),
    )(q, k, v, mask3, x, lp["wo"], lp["bo"])


def run_mlp(x1, lp, lnf_g, lnf_b, *, tq, tf, apply_final_ln):
    B, S, H = x1.shape
    F = lp["w1"].shape[1]
    nq, nf = S // tq, F // tf
    return pl.pallas_call(
        functools.partial(ln2_mlp_kernel, apply_final_ln=apply_final_ln),
        out_shape=jax.ShapeDtypeStruct((B, S, H), jnp.float32),
        grid=(B, nq, nf),
        in_specs=[
            pl.BlockSpec((1, tq, H), lambda b, qi, fi: (b, qi, 0)),
            _rep_spec(lp["ln2_g"]), _rep_spec(lp["ln2_b"]),
            pl.BlockSpec((H, tf), lambda b, qi, fi: (0, fi)),
            pl.BlockSpec((1, tf), lambda b, qi, fi: (0, fi)),
            pl.BlockSpec((tf, H), lambda b, qi, fi: (fi, 0)),
            _rep_spec(lp["b2"]),
            _rep_spec(lnf_g), _rep_spec(lnf_b),
        ],
        out_specs=pl.BlockSpec((1, tq, H), lambda b, qi, fi: (b, qi, 0)),
        scratch_shapes=[pltpu.VMEM((tq, H), jnp.float32)],
        compiler_params=pltpu.CompilerParams(
            dimension_semantics=("parallel", "parallel", "arbitrary"),
            vmem_limit_bytes=VMEM_LIMIT),
    )(x1, lp["ln2_g"], lp["ln2_b"], lp["w1"], lp["b1"], lp["w2"], lp["b2"],
      lnf_g, lnf_b)


# ---------------------------------------------------------------------------
# Parameters (synthetic, deterministic) + prep (bf16 cast, scale folding)
# ---------------------------------------------------------------------------
def init_params(key, *, vocab, hidden, ffn, num_layers, max_pos):
    keys = jax.random.split(key, 2 + 6 * num_layers)
    std = 0.02
    params = {
        "wte": std * jax.random.normal(keys[0], (vocab, hidden), jnp.float32),
        "wpe": std * jax.random.normal(keys[1], (max_pos, hidden), jnp.float32),
        "ln_f_g": jnp.ones((1, hidden), jnp.float32),
        "ln_f_b": jnp.zeros((1, hidden), jnp.float32),
        "layers": [],
    }
    for l in range(num_layers):
        k = keys[2 + 6 * l: 2 + 6 * (l + 1)]
        params["layers"].append({
            "ln1_g": jnp.ones((1, hidden), jnp.float32),
            "ln1_b": jnp.zeros((1, hidden), jnp.float32),
            "wqkv": std * jax.random.normal(k[0], (hidden, 3 * hidden), jnp.float32),
            "bqkv": jnp.zeros((1, 3 * hidden), jnp.float32),
            "wo": std * jax.random.normal(k[1], (hidden, hidden), jnp.float32),
            "bo": jnp.zeros((1, hidden), jnp.float32),
            "ln2_g": jnp.ones((1, hidden), jnp.float32),
            "ln2_b": jnp.zeros((1, hidden), jnp.float32),
            "w1": std * jax.random.normal(k[2], (hidden, ffn), jnp.float32),
            "b1": jnp.zeros((1, ffn), jnp.float32),
            "w2": std * jax.random.normal(k[3], (ffn, hidden), jnp.float32),
            "b2": jnp.zeros((1, hidden), jnp.float32),
        })
    return params


def prepare_params(params, num_heads):
    """Cast matmul weights to bf16 and fold 1/sqrt(hd) into the Q columns."""
    H = params["wte"].shape[1]
    hd = H // num_heads
    scale = 1.0 / float(hd) ** 0.5
    f32, bf16 = jnp.float32, jnp.bfloat16
    qscale = jnp.concatenate(
        [jnp.full((1, H), scale, f32), jnp.ones((1, 2 * H), f32)], axis=1)
    out = {
        "wte": params["wte"].astype(f32),
        "wpe": params["wpe"].astype(f32),
        "ln_f_g": params["ln_f_g"].astype(f32),
        "ln_f_b": params["ln_f_b"].astype(f32),
        "layers": [],
    }
    for lp in params["layers"]:
        out["layers"].append({
            "ln1_g": lp["ln1_g"].astype(f32),
            "ln1_b": lp["ln1_b"].astype(f32),
            "wqkv": (lp["wqkv"] * qscale).astype(bf16),
            "bqkv": (lp["bqkv"] * qscale).astype(f32),
            "wo": lp["wo"].astype(bf16),
            "bo": lp["bo"].astype(f32),
            "ln2_g": lp["ln2_g"].astype(f32),
            "ln2_b": lp["ln2_b"].astype(f32),
            "w1": lp["w1"].astype(bf16),
            "b1": lp["b1"].astype(f32),
            "w2": lp["w2"].astype(bf16),
            "b2": lp["b2"].astype(f32),
        })
    return out


def protclm_for_embedding(input_ids, attention_mask, params, *, num_heads):
    """Returns last_hidden_state of shape (B, S, H), matching the torch forward."""
    B, S = input_ids.shape
    if attention_mask is None:
        attention_mask = jnp.ones((B, S), jnp.float32)
    attention_mask = attention_mask.astype(jnp.float32)

    prep = prepare_params(params, num_heads)

    # Embedding lookup (data-dependent gather) is glue in plain JAX.
    positions = jnp.arange(S)
    x = (prep["wte"][input_ids] + prep["wpe"][positions][None, :, :]).astype(jnp.float32)
    mask3 = attention_mask.reshape(B, 1, S)

    F = prep["layers"][0]["w1"].shape[1]
    tq = _tile(S, 128)       # falls back to full S for small/odd sequences
    tk = tq
    tf = _tile(F, 512)

    n_layers = len(prep["layers"])
    for li, lp in enumerate(prep["layers"]):
        q, k, v = run_ln1_qkv(x, lp, num_heads=num_heads, tq=tq)
        x1 = run_attention(x, q, k, v, mask3, lp, tq=tq, tk=tk)
        x = run_mlp(x1, lp, prep["ln_f_g"], prep["ln_f_b"], tq=tq, tf=tf,
                    apply_final_ln=(li == n_layers - 1))
    return x  # last_hidden_state


if __name__ == "__main__":
    # Small synthetic config consistent with a decoder-only protein CLM.
    VOCAB, HIDDEN, FFN, HEADS, LAYERS, MAX_POS = 64, 32, 64, 2, 2, 16
    B, S = 2, 8

    key = jax.random.PRNGKey(0)
    k_param, k_ids = jax.random.split(key)
    params = init_params(k_param, vocab=VOCAB, hidden=HIDDEN, ffn=FFN,
                         num_layers=LAYERS, max_pos=MAX_POS)

    input_ids = jax.random.randint(k_ids, (B, S), 0, VOCAB, dtype=jnp.int32)
    attention_mask = jnp.array(
        [[1] * S,
         [1] * (S - 2) + [0, 0]], dtype=jnp.float32)

    out = protclm_for_embedding(input_ids, attention_mask, params, num_heads=HEADS)
    jax.block_until_ready(out)
    assert out.shape == (B, S, HIDDEN) and out.dtype == jnp.float32
    assert bool(jnp.all(jnp.isfinite(out)))
    print("KERNEL_OK")
</pallas_src>

<mosaic_0001>
module attributes {stable_mosaic.version = 11 : i64} {
  func.func @ln1_qkv_kernel(%arg0: i32, %arg1: i32, %arg2: memref<1x8x32xf32, #tpu.memory_space<vmem>>, %arg3: memref<1x32xf32, #tpu.memory_space<vmem>>, %arg4: memref<1x32xf32, #tpu.memory_space<vmem>>, %arg5: memref<32x96xbf16, #tpu.memory_space<vmem>>, %arg6: memref<1x96xf32, #tpu.memory_space<vmem>>, %arg7: memref<1x2x8x16xbf16, #tpu.memory_space<vmem>>, %arg8: memref<1x2x8x16xbf16, #tpu.memory_space<vmem>>, %arg9: memref<1x2x8x16xbf16, #tpu.memory_space<vmem>>) attributes {dimension_semantics = [#tpu.dimension_semantics<parallel>, #tpu.dimension_semantics<parallel>], iteration_bounds = array<i64: 2, 1>, scalar_prefetch = 0 : i64, scratch_operands = 0 : i64, tpu.core_type = #tpu.core_type<tc>, window_params = [{transform_indices = @transform_0, window_bounds = array<i64: 1, 8, 32>}, {pipeline_mode = #tpu.pipeline_mode<synchronous>, transform_indices = @transform_1, window_bounds = array<i64: 1, 32>}, {pipeline_mode = #tpu.pipeline_mode<synchronous>, transform_indices = @transform_2, window_bounds = array<i64: 1, 32>}, {pipeline_mode = #tpu.pipeline_mode<synchronous>, transform_indices = @transform_3, window_bounds = array<i64: 32, 96>}, {pipeline_mode = #tpu.pipeline_mode<synchronous>, transform_indices = @transform_4, window_bounds = array<i64: 1, 96>}, {transform_indices = @transform_5, window_bounds = array<i64: 1, 2, 8, 16>}, {transform_indices = @transform_6, window_bounds = array<i64: 1, 2, 8, 16>}, {transform_indices = @transform_7, window_bounds = array<i64: 1, 2, 8, 16>}]} {
    %c0 = arith.constant 0 : index
    %c0_0 = arith.constant 0 : index
    %c0_1 = arith.constant 0 : index
    %0 = vector.load %arg2[%c0, %c0_0, %c0_1] : memref<1x8x32xf32, #tpu.memory_space<vmem>>, vector<1x8x32xf32>
    %1 = vector.shape_cast %0 : vector<1x8x32xf32> to vector<8x32xf32>
    %c0_2 = arith.constant 0 : index
    %c0_3 = arith.constant 0 : index
    %2 = vector.load %arg3[%c0_2, %c0_3] : memref<1x32xf32, #tpu.memory_space<vmem>>, vector<1x32xf32>
    %c0_4 = arith.constant 0 : index
    %c0_5 = arith.constant 0 : index
    %3 = vector.load %arg4[%c0_4, %c0_5] : memref<1x32xf32, #tpu.memory_space<vmem>>, vector<1x32xf32>
    %cst = arith.constant dense<0.000000e+00> : vector<8xf32>
    %4 = vector.multi_reduction <add>, %1, %cst [1] : vector<8x32xf32> to vector<8xf32>
    %5 = vector.shape_cast %4 : vector<8xf32> to vector<8x1xf32>
    %cst_6 = arith.constant 3.200000e+01 : f32
    %6 = vector.broadcast %cst_6 : f32 to vector<8x1xf32>
    %7 = arith.divf %5, %6 : vector<8x1xf32>
    %8 = vector.broadcast %7 : vector<8x1xf32> to vector<8x32xf32>
    %9 = arith.subf %1, %8 : vector<8x32xf32>
    %10 = arith.mulf %9, %9 : vector<8x32xf32>
    %cst_7 = arith.constant dense<0.000000e+00> : vector<8xf32>
    %11 = vector.multi_reduction <add>, %10, %cst_7 [1] : vector<8x32xf32> to vector<8xf32>
    %12 = vector.shape_cast %11 : vector<8xf32> to vector<8x1xf32>
    %cst_8 = arith.constant 3.200000e+01 : f32
    %13 = vector.broadcast %cst_8 : f32 to vector<8x1xf32>
    %14 = arith.divf %12, %13 : vector<8x1xf32>
    %15 = vector.broadcast %7 : vector<8x1xf32> to vector<8x32xf32>
    %16 = arith.subf %1, %15 : vector<8x32xf32>
    %cst_9 = arith.constant 9.99999974E-6 : f32
    %17 = vector.broadcast %cst_9 : f32 to vector<8x1xf32>
    %18 = arith.addf %14, %17 : vector<8x1xf32>
    %19 = math.rsqrt %18 : vector<8x1xf32>
    %20 = vector.broadcast %19 : vector<8x1xf32> to vector<8x32xf32>
    %21 = arith.mulf %16, %20 : vector<8x32xf32>
    %22 = vector.broadcast %2 : vector<1x32xf32> to vector<8x32xf32>
    %23 = arith.mulf %21, %22 : vector<8x32xf32>
    %24 = vector.broadcast %3 : vector<1x32xf32> to vector<8x32xf32>
    %25 = arith.addf %23, %24 : vector<8x32xf32>
    %26 = arith.truncf %25 : vector<8x32xf32> to vector<8x32xbf16>
    %c0_10 = arith.constant 0 : index
    %c0_11 = arith.constant 0 : index
    %27 = vector.load %arg5[%c0_10, %c0_11] : memref<32x96xbf16, #tpu.memory_space<vmem>>, vector<32x96xbf16>
    %cst_12 = arith.constant dense<0.000000e+00> : vector<8x96xf32>
    %28 = tpu.matmul %26, %27, %cst_12 {dimension_numbers = #tpu.dot_dimension_numbers<[1], [0], [0], [1], [0, 0, 1, 1], [], []>} : vector<8x32xbf16>, vector<32x96xbf16>, vector<8x96xf32> -> vector<8x96xf32>
    %c0_13 = arith.constant 0 : index
    %c0_14 = arith.constant 0 : index
    %29 = vector.load %arg6[%c0_13, %c0_14] : memref<1x96xf32, #tpu.memory_space<vmem>>, vector<1x96xf32>
    %30 = vector.broadcast %29 : vector<1x96xf32> to vector<8x96xf32>
    %31 = arith.addf %28, %30 : vector<8x96xf32>
    %32 = vector.extract_strided_slice %31 {offsets = [0, 0], sizes = [8, 16], strides = [1, 1]} : vector<8x96xf32> to vector<8x16xf32>
    %33 = arith.truncf %32 : vector<8x16xf32> to vector<8x16xbf16>
    %c0_15 = arith.constant 0 : index
    %c0_16 = arith.constant 0 : index
    %c0_17 = arith.constant 0 : index
    %c0_18 = arith.constant 0 : index
    %34 = vector.load %arg7[%c0_15, %c0_16, %c0_17, %c0_18] : memref<1x2x8x16xbf16, #tpu.memory_space<vmem>>, vector<1x1x8x16xbf16>
    %35 = vector.shape_cast %34 : vector<1x1x8x16xbf16> to vector<8x16xbf16>
    %36 = vector.shape_cast %33 : vector<8x16xbf16> to vector<1x1x8x16xbf16>
    tpu.vector_store %arg7[%c0_15, %c0_16, %c0_17, %c0_18], %36 {strides = array<i32>} : memref<1x2x8x16xbf16, #tpu.memory_space<vmem>>, vector<1x1x8x16xbf16>,
    %37 = vector.extract_strided_slice %31 {offsets = [0, 32], sizes = [8, 16], strides = [1, 1]} : vector<8x96xf32> to vector<8x16xf32>
    %38 = arith.truncf %37 : vector<8x16xf32> to vector<8x16xbf16>
    %c0_19 = arith.constant 0 : index
    %c0_20 = arith.constant 0 : index
    %c0_21 = arith.constant 0 : index
    %c0_22 = arith.constant 0 : index
    %39 = vector.load %arg8[%c0_19, %c0_20, %c0_21, %c0_22] : memref<1x2x8x16xbf16, #tpu.memory_space<vmem>>, vector<1x1x8x16xbf16>
    %40 = vector.shape_cast %39 : vector<1x1x8x16xbf16> to vector<8x16xbf16>
    %41 = vector.shape_cast %38 : vector<8x16xbf16> to vector<1x1x8x16xbf16>
    tpu.vector_store %arg8[%c0_19, %c0_20, %c0_21, %c0_22], %41 {strides = array<i32>} : memref<1x2x8x16xbf16, #tpu.memory_space<vmem>>, vector<1x1x8x16xbf16>,
    %42 = vector.extract_strided_slice %31 {offsets = [0, 64], sizes = [8, 16], strides = [1, 1]} : vector<8x96xf32> to vector<8x16xf32>
    %43 = arith.truncf %42 : vector<8x16xf32> to vector<8x16xbf16>
    %c0_23 = arith.constant 0 : index
    %c0_24 = arith.constant 0 : index
    %c0_25 = arith.constant 0 : index
    %c0_26 = arith.constant 0 : index
    %44 = vector.load %arg9[%c0_23, %c0_24, %c0_25, %c0_26] : memref<1x2x8x16xbf16, #tpu.memory_space<vmem>>, vector<1x1x8x16xbf16>
    %45 = vector.shape_cast %44 : vector<1x1x8x16xbf16> to vector<8x16xbf16>
    %46 = vector.shape_cast %43 : vector<8x16xbf16> to vector<1x1x8x16xbf16>
    tpu.vector_store %arg9[%c0_23, %c0_24, %c0_25, %c0_26], %46 {strides = array<i32>} : memref<1x2x8x16xbf16, #tpu.memory_space<vmem>>, vector<1x1x8x16xbf16>,
    %47 = vector.extract_strided_slice %31 {offsets = [0, 16], sizes = [8, 16], strides = [1, 1]} : vector<8x96xf32> to vector<8x16xf32>
    %48 = arith.truncf %47 : vector<8x16xf32> to vector<8x16xbf16>
    %c0_27 = arith.constant 0 : index
    %c1 = arith.constant 1 : index
    %c0_28 = arith.constant 0 : index
    %c0_29 = arith.constant 0 : index
    %49 = vector.load %arg7[%c0_27, %c1, %c0_28, %c0_29] : memref<1x2x8x16xbf16, #tpu.memory_space<vmem>>, vector<1x1x8x16xbf16>
    %50 = vector.shape_cast %49 : vector<1x1x8x16xbf16> to vector<8x16xbf16>
    %51 = vector.shape_cast %48 : vector<8x16xbf16> to vector<1x1x8x16xbf16>
    tpu.vector_store %arg7[%c0_27, %c1, %c0_28, %c0_29], %51 {strides = array<i32>} : memref<1x2x8x16xbf16, #tpu.memory_space<vmem>>, vector<1x1x8x16xbf16>,
    %52 = vector.extract_strided_slice %31 {offsets = [0, 48], sizes = [8, 16], strides = [1, 1]} : vector<8x96xf32> to vector<8x16xf32>
    %53 = arith.truncf %52 : vector<8x16xf32> to vector<8x16xbf16>
    %c0_30 = arith.constant 0 : index
    %c1_31 = arith.constant 1 : index
    %c0_32 = arith.constant 0 : index
    %c0_33 = arith.constant 0 : index
    %54 = vector.load %arg8[%c0_30, %c1_31, %c0_32, %c0_33] : memref<1x2x8x16xbf16, #tpu.memory_space<vmem>>, vector<1x1x8x16xbf16>
    %55 = vector.shape_cast %54 : vector<1x1x8x16xbf16> to vector<8x16xbf16>
    %56 = vector.shape_cast %53 : vector<8x16xbf16> to vector<1x1x8x16xbf16>
    tpu.vector_store %arg8[%c0_30, %c1_31, %c0_32, %c0_33], %56 {strides = array<i32>} : memref<1x2x8x16xbf16, #tpu.memory_space<vmem>>, vector<1x1x8x16xbf16>,
    %57 = vector.extract_strided_slice %31 {offsets = [0, 80], sizes = [8, 16], strides = [1, 1]} : vector<8x96xf32> to vector<8x16xf32>
    %58 = arith.truncf %57 : vector<8x16xf32> to vector<8x16xbf16>
    %c0_34 = arith.constant 0 : index
    %c1_35 = arith.constant 1 : index
    %c0_36 = arith.constant 0 : index
    %c0_37 = arith.constant 0 : index
    %59 = vector.load %arg9[%c0_34, %c1_35, %c0_36, %c0_37] : memref<1x2x8x16xbf16, #tpu.memory_space<vmem>>, vector<1x1x8x16xbf16>
    %60 = vector.shape_cast %59 : vector<1x1x8x16xbf16> to vector<8x16xbf16>
    %61 = vector.shape_cast %58 : vector<8x16xbf16> to vector<1x1x8x16xbf16>
    tpu.vector_store %arg9[%c0_34, %c1_35, %c0_36, %c0_37], %61 {strides = array<i32>} : memref<1x2x8x16xbf16, #tpu.memory_space<vmem>>, vector<1x1x8x16xbf16>,
    return
  }
  func.func @transform_0(%arg0: i32, %arg1: i32) -> (i32, i32, i32) {
    %c0_i32 = arith.constant 0 : i32
    %c0_i32_0 = arith.constant 0 : i32
    return %arg0, %arg1, %c0_i32 : i32, i32, i32
  }
  func.func @transform_1(%arg0: i32, %arg1: i32) -> (i32, i32) {
    %c0_i32 = arith.constant 0 : i32
    %c0_i32_0 = arith.constant 0 : i32
    %c0_i32_1 = arith.constant 0 : i32
    return %c0_i32, %c0_i32_0 : i32, i32
  }
  func.func @transform_2(%arg0: i32, %arg1: i32) -> (i32, i32) {
    %c0_i32 = arith.constant 0 : i32
    %c0_i32_0 = arith.constant 0 : i32
    %c0_i32_1 = arith.constant 0 : i32
    return %c0_i32, %c0_i32_0 : i32, i32
  }
  func.func @transform_3(%arg0: i32, %arg1: i32) -> (i32, i32) {
    %c0_i32 = arith.constant 0 : i32
    %c0_i32_0 = arith.constant 0 : i32
    %c0_i32_1 = arith.constant 0 : i32
    return %c0_i32, %c0_i32_0 : i32, i32
  }
  func.func @transform_4(%arg0: i32, %arg1: i32) -> (i32, i32) {
    %c0_i32 = arith.constant 0 : i32
    %c0_i32_0 = arith.constant 0 : i32
    %c0_i32_1 = arith.constant 0 : i32
    return %c0_i32, %c0_i32_0 : i32, i32
  }
  func.func @transform_5(%arg0: i32, %arg1: i32) -> (i32, i32, i32, i32) {
    %c0_i32 = arith.constant 0 : i32
    %c0_i32_0 = arith.constant 0 : i32
    %c0_i32_1 = arith.constant 0 : i32
    return %arg0, %c0_i32, %arg1, %c0_i32_0 : i32, i32, i32, i32
  }
  func.func @transform_6(%arg0: i32, %arg1: i32) -> (i32, i32, i32, i32) {
    %c0_i32 = arith.constant 0 : i32
    %c0_i32_0 = arith.constant 0 : i32
    %c0_i32_1 = arith.constant 0 : i32
    return %arg0, %c0_i32, %arg1, %c0_i32_0 : i32, i32, i32, i32
  }
  func.func @transform_7(%arg0: i32, %arg1: i32) -> (i32, i32, i32, i32) {
    %c0_i32 = arith.constant 0 : i32
    %c0_i32_0 = arith.constant 0 : i32
    %c0_i32_1 = arith.constant 0 : i32
    return %arg0, %c0_i32, %arg1, %c0_i32_0 : i32, i32, i32, i32
  }
}

</mosaic_0001>

<bundles_post_ra>
// kernel: tpu_custom_call.1
= control target key start
LH: loop header
LB: loop body
LE: loop exit
PB: predicated region body
PF: predicated region fallthrough
CT: control target
= control target key end

     0   :  { %s1430_s0 = inlined_call_operand.hbm [shape: f32[2,8,32], index: 0, kind: input, shape index: {}]   ;;  %s1431_s1 = inlined_call_operand.vmem [shape: f32[1,32], index: 1, kind: input, shape index: {}]   ;;  %s1432_s2 = inlined_call_operand.vmem [shape: f32[1,32], index: 2, kind: input, shape index: {}]   ;;  %s1433_s3 = inlined_call_operand.hbm [shape: bf16[32,96], index: 3, kind: input, shape index: {}]   ;;  %s1434_s4 = inlined_call_operand.vmem [shape: f32[1,96], index: 4, kind: input, shape index: {}]   ;;  %s1435_s5 = inlined_call_operand.hbm [shape: bf16[2,2,8,16], index: 5, kind: output, shape index: {0}]   ;;  %s1436_s6 = inlined_call_operand.hbm [shape: bf16[2,2,8,16], index: 6, kind: output, shape index: {1}]   ;;  %s1437_s7 = inlined_call_operand.hbm [shape: bf16[2,2,8,16], index: 7, kind: output, shape index: {2}]  }
   0x1   :  { %1445 = sst [smem:[#allocation16_spill]] %s1430_s0 }
   0x2   :  { %1446 = sst [smem:[#allocation17_spill]] %s1431_s1 }
   0x3   :  { %1447 = sst [smem:[#allocation18_spill]] %s1432_s2 }
   0x4   :  { %1448 = sst [smem:[#allocation19_spill]] %s1433_s3 }
   0x5   :  { %13 = vsyncpa [#allocation3], 0 }
   0x6   :  { %15 = vsyncpa [#allocation3 + $0x1], 0 }
   0x7   :  { %16 = vsyncpa [#allocation6], 0 }
   0x8   :  { %17 = vsyncpa [#allocation4], 0 }
   0x9   :  { %19 = vsyncpa [#allocation4 + $0x1], 0 }
   0xa   :  { %20 = vsyncpa [#allocation9], 0 }
   0xb   :  { %22 = vsyncpa [#allocation9 + $0x1], 0  ;;  %s1102_s24 = smov 0   ;;  %s1104_s25 = smov 0  }
   0xc   :  { %s1106_s26 = smov 0   ;;  %s1108_s27 = smov 0  }
   0xd   :  { %s1110_s28 = smov 0   ;;  %s1112_s29 = smov 0  }
   0xe LB: > { %s1133_s30 = sadd.s32 4294967295, %s1045_s29   ;;  %s1441_s8 = sadd.s32 4294967294, %s1045_s29   ;;  %s1045_s29 = sphi %s1112_s29, %s28_s29   ;;  %s1041_s28 = sphi %s1110_s28, %s1475_s28   ;;  %s1037_s27 = sphi %s1108_s27, %s1474_s27   ;;  %s1033_s26 = sphi %s1106_s26, %s1473_s26   ;;  %s1029_s25 = sphi %s1104_s25, %s1472_s25   ;;  %s1025_s24 = sphi %s1102_s24, %s1471_s24  }
   0xf   : > { %p62_p0 = scmp.ne.s32.totalorder %s1029_s25, %s1025_s24  ;;  %p1438_p1 = scmp.eq.s32.totalorder %s1133_s30, 0 }
  0x10   : > { %p178_p3 = scmp.eq.s32.totalorder %s1441_s8, 1  ;;  %p697_p5 = scmp.ge.s32.totalorder %s1045_s29, 1 }
  0x11   : > { %p1144_p4 = por %p1438_p1, %p62_p0  ;;  %p241_p7 = scmp.lt.s32.totalorder %s1045_s29, 3 }
  0x12   : > { %p1149_p6 = por %p178_p3, %p62_p0  ;;  %s1047_s12 = smov [#allocation5]  }
  0x13   : > { %s1449_s9 = scalar_select %p1144_p4, 1, 0 }
  0x14   : > { %s1450_s10 = scalar_select %p1149_p6, 1, 0 }
  0x15   : > { %p1154_p8 = pnand %p697_p5, %p241_p7  ;;  %s259_s13 = sshll.u32 %s1047_s12, 4  ;;  %s260_s13 = int_to_ptr.vmem [resolvable:$true] %s259_s13 }
  0x16   : > { %s40_s15 = sadd.s32 1, %s1041_s28  ;;  %s1453_s3 = sld [smem:[#allocation19_spill]] }
  0x17   : > { %s1451_s11 = scalar_select %p1154_p8, 1, 0 }
  0x18   : > { %p756_p9 = pneg %p1154_p8 }
  0x1a   : > { %p1163_p11 = pnand %p756_p9, %p1438_p1 }
  0x1c   : > { %s841_s18 = scalar_lea.hbm %s1453_s3, 256  ;;  %p843_p13 = pneg %p1163_p11 }
  0x1d   : > { %p842_p12 = scmp.ne.s32.totalorder %s1453_s3, %s841_s18  ;;  %p848_p5 = scmp.lt.u32.totalorder %s841_s18, %s1453_s3 }
  0x1f   : > { %p844_p0 = pnand %p843_p13, %p842_p12 }
  0x21   : > { %p845_p3 = pneg %p844_p0 }
  0x23   : > { %p850_p7 = pnand %p848_p5, %p845_p3 }
  0x25   : > { %853 = shalt.err (!%p850_p7)
}
  0x26   : > { %s854_s23 = scalar_lea.vmem %s260_s13, 256  ;;  %p862_p2 = scmp.lt.s32.totalorder %s260_s13, %s260_s13 }
  0x27   : > { %p855_p9 = scmp.ne.s32.totalorder %s260_s13, %s854_s23  ;;  %p863_p6 = scmp.lt.s32.totalorder %s854_s23, %s854_s23 }
  0x29   : > { %p857_p10 = pnand %p855_p9, %p843_p13  ;;  %p864_p4 = por %p863_p6, %p862_p2 }
  0x2b   : > { %p858_p1 = pneg %p857_p10 }
  0x2d   : > { %p865_p8 = pnand %p864_p4, %p858_p1 }
  0x2f   : > { %868 = shalt.err (!%p865_p8)
}
  0x30   : > { %s1048_s12 = smov 64   ;;  %s1049_s16 = smov 4  }
  0x31   : > { %759 = dma.hbm_to_vmem [thread:$0]  (!%p1163_p11), %s1453_s3, 256, %s260_s13, [#allocation6], %s1048_s12, %s1048_s12, %s1049_s16  }
  0x32   : > { %p42_p1 = scmp.ge.s32.totalorder %s40_s15, 2  ;;  %s49_s19 = sadd.s32 1, %s1033_s26 }
  0x33   : > { %p56_p2 = scmp.ne.s32.totalorder %s1033_s26, %s1029_s25  ;;  %p57_p4 = scmp.eq.s32.totalorder %s1045_s29, 0 }
  0x34   : > { %s1477_s15 = smov (%p42_p1, %s40_s15), 0  ;;  %p1456_p8 = scmp.eq.s32.totalorder %s1133_s30, 1 }
  0x35   : > { %1454 = sst [smem:[#allocation15_spill]] %s1477_s15  ;;  %p1190_p6 = por %p57_p4, %p56_p2 }
  0x36   : > { %p1196_p10 = por %p1456_p8, %p56_p2  ;;  %s44_s14 = ssub.s32 %s1041_s28, %s1477_s15 }
  0x37   : > { %p775_p12 = scmp.lt.s32.totalorder %s1045_s29, 2  ;;  %p47_p11 = scmp.eq.s32.totalorder %s44_s14, 0 }
  0x38   : > { %s276_s13 = sand.u32 1, %s1033_s26   ;;  %s701_s12 = sshll.u32 %s1041_s28, 7 }
  0x39   : > { %s700_s22 = sshll.u32 %s276_s13, 3  ;;  %s1458_s0 = sld [smem:[#allocation16_spill]] }
  0x3a   : > { %s1205_s23 = scalar_select %p47_p11, %s1033_s26, %s49_s19  }
  0x3b   : > { %s280_s8 = scalar_lea.vmem [#allocation2], %s700_s22  ;;  %p1217_p13 = pnand %p775_p12, %p1190_p6 }
  0x3c   : > { %s288_s3 = sshll.u32 %s280_s8, 4  ;;  %s277_s19 = scalar_lea.sflag [#allocation3], %s276_s13  ;;  %s1213_s3 = int_to_ptr.vmem [resolvable:$true] %s288_s3 }
  0x3d   : > { %p871_p3 = pneg %p1217_p13 }
  0x3f   : > { %s1211_s18 = scalar_lea.hbm %s1458_s0, %s701_s12  ;;  %s874_s12 = scalar_lea.hbm %s1458_s0, 256 }
  0x40   : > { %s869_s15 = scalar_lea.hbm %s1211_s18, 128  ;;  %p875_p9 = scmp.lt.u32.totalorder %s1211_s18, %s1458_s0 }
  0x41   : > { %p870_p0 = scmp.ne.s32.totalorder %s1211_s18, %s869_s15  ;;  %p876_p1 = scmp.lt.u32.totalorder %s874_s12, %s869_s15 }
  0x42   : > { %p878_p4 = scmp.lt.u32.totalorder %s869_s15, %s1211_s18 }
  0x43   : > { %p872_p5 = pnand %p871_p3, %p870_p0  ;;  %p877_p2 = por %p876_p1, %p875_p9 }
  0x45   : > { %p873_p7 = pneg %p872_p5  ;;  %p879_p6 = por %p878_p4, %p877_p2 }
  0x47   : > { %p880_p8 = pnand %p879_p6, %p873_p7 }
  0x49   : > { %883 = shalt.err (!%p880_p8)
}
  0x4a   : > { %s884_s13 = scalar_lea.vmem %s1213_s3, 128  ;;  %s1050_s17 = smov [#allocation2]  }
  0x4b   : > { %p885_p12 = scmp.ne.s32.totalorder %s1213_s3, %s884_s13  ;;  %s889_s22 = sshll.u32 %s1050_s17, 4  ;;  %s890_s22 = int_to_ptr.vmem [resolvable:$false] %s889_s22 }
  0x4c   : > { %s891_s8 = scalar_lea.vmem %s890_s22, 256  ;;  %p892_p5 = scmp.lt.s32.totalorder %s1213_s3, %s890_s22 }
  0x4d   : > { %p887_p11 = pnand %p885_p12, %p871_p3  ;;  %p893_p9 = scmp.lt.s32.totalorder %s891_s8, %s884_s13 }
  0x4f   : > { %p888_p0 = pneg %p887_p11  ;;  %p894_p1 = por %p893_p9, %p892_p5 }
  0x51   : > { %p895_p2 = pnand %p894_p1, %p888_p0 }
  0x53   : > { %898 = shalt.err (!%p895_p2)
}
  0x54   : > { %763 = dma.hbm_to_vmem [thread:$0]  (!%p1217_p13), %s1211_s18, 128, %s1213_s3, %s277_s19  }
  0x55   : > { %p1460_p7 = scmp.ne.s32.totalorder %s1451_s11, 0 }
  0x56   : > { %s1249_s15 = sand.u32 (!%p1460_p7), 1, %s1029_s25   ;;  %p1461_p3 = scmp.ne.s32.totalorder (!%p1460_p7), %s1449_s9, 0 }
  0x57   : > { %297 = sbr.rel (%p1460_p7) target bundleno = 811 (0x32b), region = 40  ;;  %s1252_s12 = sshll.u32 (!%p1460_p7), %s1249_s15, 3 }
  0x58   : > { %s300_s20 = scalar_lea.sflag (!%p1460_p7), [#allocation3], %s1249_s15  ;;  %s303_s16 = scalar_lea.vmem (!%p1460_p7), [#allocation2], %s1252_s12 }
  0x5e   : > { %1008 = dma.done.wait (%p1461_p3), %s300_s20, 128  }
  0x5f   : > { %1010 = vsyncadd (%p1461_p3), %s300_s20, 4294967168  ;;  %p1462_p13 = scmp.eq.s32.totalorder %s1133_s30, 0 }
  0x61   : > { %1012 = dma.done.wait (%p1462_p13), [#allocation6], 256   ;;  %p1463_p4 = pmov %p1462_p13 }
  0x62   : > { %vm352_vm0 = vcmask 261120   ;;  %v349_v0 = vld [vmem:[%s303_s16] sm:$0xff]  ;;  %v837_v7 = vld [vmem:[#allocation5] sm:$0xff]   ;;  %v1051_v8 = vmov 0.0   ;;  %vm1052_vm1 = vmmov 0   ;;  %v838_v9 = vld [vmem:[#allocation5 + $0x8] sm:$0xff]  }
  0x63   : > { %1014 = vsyncadd (%p1463_p4), [#allocation6], 4294967040  ;;  %v353_v1 = vsel %vm352_vm0, %v349_v0, 0.0  ;;  %736 = vmatprep.subr.bf16.mxu0 %v1051_v8  ;;  %740 = vmatprep.mubr.msk.bf16.mxu0 %vm1052_vm1, %v1051_v8  ;;  %s1464_s1 = sld [smem:[#allocation17_spill]]  ;;  %s1465_s2 = sld [smem:[#allocation18_spill]]  ;;  %vm449_vm2 = vcmask 125952  }
  0x64   : > { %354 = vadd.xlane.f32.xlu0 %v353_v1  ;;  %737 = vmatpush3.bf16.msra.mxu0 %v837_v7  ;;  %v710_v20 = vld [vmem:[%s1434_s4] ss:$0 sm:$0xff]  ;;  %s1443_s13 = smov 64   ;;  %s1054_s17 = smov 96  }
  0x65   : > { %738 = vmatprep.subr.bf16.mxu0 %v1051_v8  ;;  %s1278_s22 = scalar_lea.vmem [#allocation7], %s1252_s12  ;;  %s1055_s8 = smov 80  }
  0x66   : > { %s1056_s20 = smov 112   ;;  %s1057_s16 = smov 48  }
  0x67   : > { %s340_s3 = scalar_lea.vmem [#allocation8], %s1252_s12  ;;  %s482_s11 = sand.u32 1, %s1133_s30  }
  0x68   : > { %739 = vmatpush3.bf16.msra.mxu0 %v838_v9  ;;  %s519_s9 = sshll.u32 %s340_s3, 4  ;;  %s1285_s18 = sshll.u32 %s1037_s27, 7  ;;  %s1292_s9 = int_to_ptr.vmem [resolvable:$true] %s519_s9 }
  0x69   : > { %v708_v14 = vld [vmem:[%s1464_s1] ss:$0 sm:$0xff]  ;;  %s1288_s14 = scalar_lea.vmem [#allocation10], %s1252_s12  ;;  %s502_s19 = sshll.u32 %s1278_s22, 4  ;;  %s1303_s19 = int_to_ptr.vmem [resolvable:$true] %s502_s19 }
  0x6a   : > { %v709_v16 = vld [vmem:[%s1465_s2] ss:$0 sm:$0xff]  ;;  %s1305_s27 = scalar_lea.sflag [#allocation9], %s482_s11  ;;  %s899_s12 = scalar_lea.vmem %s1292_s9, 128 }
  0x6b   : > { %p900_p6 = scmp.ne.s32.totalorder %s1292_s9, %s899_s12 }
  0x6d   : > { %p901_p8 = pnand %p900_p6, %p1196_p10 }
  0x6f   : > { %p902_p12 = pneg %p901_p8 }
  0xf1   : > { %v355_v2 = vpop.xlane.xlu0 %354 }
  0xf2   : > { %v357_v3 = vmul.f32 0.03125, %v355_v2 }
  0xf4   : > { %v358_v4 = vsub.f32 %v349_v0, %v357_v3 }
  0xf6   : > { %v359_v5 = vmul.f32 %v358_v4, %v358_v4 }
  0xf8   : > { %v360_v6 = vsel %vm352_vm0, %v359_v5, 0.0 }
  0xf9   : > { %361 = vadd.xlane.f32.xlu0 %v360_v6 }
 0x186   : > { %v362_v10 = vpop.xlane.xlu0 %361 }
 0x187   : > { %v363_v11 = vmul.f32 0.03125, %v362_v10 }
 0x189   : > { %v364_v12 = vadd.f32 1e-05, %v363_v11 }
 0x18b   : > { %839 = vrsqrt.f32 %v364_v12 }
 0x195   : > { %v840_v13 = vpop.eup %839 }
 0x196   : > { %v366_v15 = vmul.f32 %v840_v13, %v358_v4 }
 0x198   : > { %v373_v17 = vmul.f32 %v708_v14, %v366_v15 }
 0x19a   : > { %v380_v18 = vadd.f32 %v709_v16, %v373_v17 }
 0x19c   : > { %v381_v19 = vpack.c.bf16 %v380_v18, %v380_v18 }
 0x19e   : > { %741 = vmatmul.mubr.msk.bf16.vlgmr.msra.gmra.mrb[0].mxu0 %vm352_vm0, %v381_v19 }
 0x271   : > { %v442_v21 = vpop.f32.mrb[0].mxu0 }
 0x272   : > { %v443_v22 = vadd.f32 %v710_v20, %v442_v21  ;;  %v742_v23 = vpop.f32.mrb[1].mxu0 }
 0x273   : > { %v445_v24 = vpop.f32.mrb[2].mxu0 }
 0x274   : > { %v448_v25 = vpack.c.bf16 %v443_v22, %v443_v22  ;;  %v743_v26 = vpop.f32.mrb[3].mxu0 }
 0x276   : > { %458 = vrot.lane.b32.xlu0 %v448_v25, %s1443_s13  ;;  %454 = vrot.lane.b32.xlu1 %v448_v25, %s1054_s17  ;;  %450 = vst.msk [vmem:[%s1278_s22] sm:$0xf] %vm449_vm2, %v448_v25 }
 0x27a   : > { %467 = vrot.lane.b32.xlu1 %v448_v25, %s1055_s8  ;;  %s1300_s8 = scalar_lea.hbm %s1436_s6, %s1285_s18 }
 0x27e   : > { %462 = vrot.lane.b32.xlu1 %v448_v25, %s1056_s20  ;;  %s1058_s20 = smov [#allocation8]  }
 0x282   : > { %472 = vrot.lane.b32.xlu1 %v448_v25, %s1057_s16  ;;  %s903_s16 = sshll.u32 %s1058_s20, 4  ;;  %s904_s16 = int_to_ptr.vmem [resolvable:$false] %s903_s16 }
 0x283   : > { %s905_s13 = scalar_lea.vmem %s904_s16, 256  ;;  %p906_p11 = scmp.lt.s32.totalorder %s1292_s9, %s904_s16 }
 0x284   : > { %p907_p0 = scmp.lt.s32.totalorder %s905_s13, %s899_s12 }
 0x286   : > { %p908_p5 = por %p907_p0, %p906_p11 }
 0x288   : > { %p909_p9 = pnand %p908_p5, %p902_p12 }
 0x2e8   : > { %v459_v27 = vpop.permute.xlu0 %458  ;;  %v455_v28 = vpop.permute.xlu1 %454 }
 0x2e9   : > { %461 = vst.msk [vmem:[%s1288_s14] sm:$0xf] %vm449_vm2, %v459_v27  ;;  %457 = vst.msk [vmem:[%s340_s3] sm:$0xf] %vm449_vm2, %v455_v28 }
 0x2ec   : > { %v468_v29 = vpop.permute.xlu1 %467 }
 0x2ed   : > { %716 = vst.msk [vmem:[%s340_s3 + $0x4] sm:$0xf] %vm449_vm2, %v468_v29 }
 0x2ee   : > { %912 = shalt.err (!%p909_p9)
}
 0x2ef   : > { %s913_s3 = scalar_lea.hbm %s1300_s8, 128  ;;  %s917_s17 = scalar_lea.hbm %s1436_s6, 256 }
 0x2f0   : > { %p914_p1 = scmp.ne.s32.totalorder %s1300_s8, %s913_s3  ;;  %p918_p3 = scmp.lt.u32.totalorder %s1300_s8, %s1436_s6 }
 0x2f1   : > { %p919_p13 = scmp.lt.u32.totalorder %s917_s17, %s913_s3  ;;  %p921_p6 = scmp.lt.u32.totalorder %s913_s3, %s1300_s8 }
 0x2f2   : > { %p915_p2 = pnand %p914_p1, %p1196_p10 }
 0x2f3   : > { %p920_p4 = por %p919_p13, %p918_p3 }
 0x2f4   : > { %p916_p7 = pneg %p915_p2 }
 0x2f5   : > { %p922_p8 = por %p921_p6, %p920_p4 }
 0x2f7   : > { %p923_p12 = pnand %p922_p8, %p916_p7 }
 0x2f9   : > { %926 = shalt.err (!%p923_p12)
}
 0x2fa   : > { %s1059_s13 = smov 4   ;;  %s1466_s12 = smov 64   ;;  %v463_v30 = vpop.permute.xlu1 %462 }
 0x2fb   : > { %751 = dma.vmem_to_hbm [thread:$0]  (%p1196_p10), %s1292_s9, 128, %s1300_s8, %s1305_s27, %s1466_s12, %s1466_s12, %s1059_s13  }
 0x2fc   : > { %s1336_s30 = scalar_lea.hbm %s1435_s5, %s1285_s18  ;;  %s536_s17 = sshll.u32 %s1288_s14, 4  ;;  %715 = vst.msk [vmem:[%s1278_s22 + $0x4] sm:$0xf] %vm449_vm2, %v463_v30  ;;  %s1370_s17 = int_to_ptr.vmem [resolvable:$true] %s536_s17 }
 0x2fd   : > { %s478_s20 = scalar_lea.sflag [#allocation4], %s1249_s15  ;;  %s927_s16 = scalar_lea.vmem %s1303_s19, 128 }
 0x2fe   : > { %p928_p11 = scmp.ne.s32.totalorder %s1303_s19, %s927_s16  ;;  %s1060_s0 = smov [#allocation7]  }
 0x2ff   : > { %s931_s1 = sshll.u32 %s1060_s0, 4  ;;  %s932_s1 = int_to_ptr.vmem [resolvable:$false] %s931_s1 }
 0x300   : > { %p929_p0 = pnand %p928_p11, %p1196_p10  ;;  %s933_s2 = scalar_lea.vmem %s932_s1, 256 }
 0x301   : > { %p934_p9 = scmp.lt.s32.totalorder %s1303_s19, %s932_s1  ;;  %p935_p1 = scmp.lt.s32.totalorder %s933_s2, %s927_s16 }
 0x302   : > { %p930_p5 = pneg %p929_p0 }
 0x303   : > { %p936_p2 = por %p935_p1, %p934_p9 }
 0x305   : > { %p937_p7 = pnand %p936_p2, %p930_p5 }
 0x307   : > { %940 = shalt.err (!%p937_p7)
}
 0x308   : > { %s941_s22 = scalar_lea.hbm %s1336_s30, 128  ;;  %s945_s0 = scalar_lea.hbm %s1435_s5, 256 }
 0x309   : > { %p942_p3 = scmp.ne.s32.totalorder %s1336_s30, %s941_s22  ;;  %p946_p6 = scmp.lt.u32.totalorder %s1336_s30, %s1435_s5 }
 0x30a   : > { %p947_p8 = scmp.lt.u32.totalorder %s945_s0, %s941_s22  ;;  %p949_p11 = scmp.lt.u32.totalorder %s941_s22, %s1336_s30 }
 0x30b   : > { %p943_p13 = pnand %p942_p3, %p1196_p10 }
 0x30c   : > { %p948_p12 = por %p947_p8, %p946_p6 }
 0x30d   : > { %p944_p4 = pneg %p943_p13 }
 0x30e   : > { %p950_p0 = por %p949_p11, %p948_p12 }
 0x310   : > { %p951_p5 = pnand %p950_p0, %p944_p4 }
 0x312   : > { %954 = shalt.err (!%p951_p5)
}
 0x313   : > { %750 = dma.vmem_to_hbm [thread:$0]  (%p1196_p10), %s1303_s19, 128, %s1336_s30, %s478_s20, %s1466_s12, %s1466_s12, %s1059_s13   ;;  %v473_v31 = vpop.permute.xlu1 %472 }
 0x314   : > { %s1376_s16 = scalar_lea.hbm %s1437_s7, %s1285_s18  ;;  %717 = vst.msk [vmem:[%s1288_s14 + $0x4] sm:$0xf] %vm449_vm2, %v473_v31  ;;  %s955_s15 = scalar_lea.vmem %s1370_s17, 128 }
 0x315   : > { %p956_p9 = scmp.ne.s32.totalorder %s1370_s17, %s955_s15  ;;  %s1061_s19 = smov [#allocation10]  }
 0x316   : > { %s959_s30 = sshll.u32 %s1061_s19, 4  ;;  %s960_s30 = int_to_ptr.vmem [resolvable:$false] %s959_s30 }
 0x317   : > { %p957_p1 = pnand %p956_p9, %p1196_p10  ;;  %s961_s20 = scalar_lea.vmem %s960_s30, 256 }
 0x318   : > { %p962_p7 = scmp.lt.s32.totalorder %s1370_s17, %s960_s30  ;;  %p963_p3 = scmp.lt.s32.totalorder %s961_s20, %s955_s15 }
 0x319   : > { %p958_p2 = pneg %p957_p1 }
 0x31a   : > { %p964_p13 = por %p963_p3, %p962_p7 }
 0x31c   : > { %p965_p4 = pnand %p964_p13, %p958_p2 }
 0x31e   : > { %968 = shalt.err (!%p965_p4)
}
 0x31f   : > { %s969_s18 = scalar_lea.hbm %s1376_s16, 128  ;;  %s973_s9 = scalar_lea.hbm %s1437_s7, 256 }
 0x320   : > { %p970_p6 = scmp.ne.s32.totalorder %s1376_s16, %s969_s18  ;;  %p974_p11 = scmp.lt.u32.totalorder %s1376_s16, %s1437_s7 }
 0x321   : > { %p975_p0 = scmp.lt.u32.totalorder %s973_s9, %s969_s18  ;;  %p977_p9 = scmp.lt.u32.totalorder %s969_s18, %s1376_s16 }
 0x322   : > { %p971_p8 = pnand %p970_p6, %p1196_p10 }
 0x323   : > { %p976_p5 = por %p975_p0, %p974_p11 }
 0x324   : > { %p972_p12 = pneg %p971_p8 }
 0x325   : > { %p978_p1 = por %p977_p9, %p976_p5 }
 0x327   : > { %p979_p2 = pnand %p978_p1, %p972_p12 }
 0x329   : > { %982 = shalt.err (!%p979_p2)
}
 0x32a   : > { %752 = dma.vmem_to_hbm [thread:$0]  (%p1196_p10), %s1370_s17, 128, %s1376_s16, %s1305_s27, %s1466_s12, %s1466_s12, %s1059_s13  }
 0x32b PF: > { %s551_s3 = sand.u32 1, %s1025_s24   ;;  %p1467_p7 = scmp.ne.s32.totalorder %s1450_s10, 0 }
 0x32c   : > { %p1468_p3 = scmp.ge.s32.totalorder %s1045_s29, 2  ;;  %s552_s1 = scalar_lea.sflag [#allocation4], %s551_s3 }
 0x32e   : > { %p765_p13 = pnand %p1468_p3, %p1467_p7 }
 0x330   : > { %1016 = dma.done.wait (!%p765_p13), %s552_s1, 128  }
 0x331   : > { %1018 = vsyncadd (!%p765_p13), %s552_s1, 4294967168  ;;  %s1469_s21 = sadd.s32 4294967294, %s1045_s29  }
 0x332   : > { %s560_s2 = sand.u32 1, %s1469_s21  }
 0x333   : > { %s561_s11 = scalar_lea.sflag [#allocation9], %s560_s2 }
 0x334   : > { %1020 = dma.done.wait (!%p765_p13), %s561_s11, 256  }
 0x335   : > { %1022 = vsyncadd (!%p765_p13), %s561_s11, 4294967040  ;;  %s28_s29 = sadd.s32 1, %s1045_s29   ;;  %s1470_s13 = sld [smem:[#allocation15_spill]] }
 0x336   : > { %p25_p10 = scmp.ge.s32.totalorder %s28_s29, 4   ;;  %s1471_s24 = smov %s1029_s25 }
 0x337   : > { %s1472_s25 = smov %s1033_s26  ;;  %s1473_s26 = smov %s1205_s23 }
 0x338   : > { %s1474_s27 = smov %s1041_s28  ;;  %27 = sbr.rel (!%p25_p10) target bundleno = 14 (0xe), region = 124 }
 0x33b   : > { %s1475_s28 = smov %s1470_s13 }
 0x33f   :  { %575 = vsyncpa [#allocation3], 1 }
 0x340   :  { %577 = vsyncpa [#allocation3 + $0x1], 1 }
 0x341   :  { %578 = vsyncpa [#allocation6], 1 }
 0x342   :  { %579 = vsyncpa [#allocation4], 1 }
 0x343   :  { %581 = vsyncpa [#allocation4 + $0x1], 1 }
 0x344   :  { %582 = vsyncpa [#allocation9], 1 }
 0x345   :  { %584 = vsyncpa [#allocation9 + $0x1], 1 }

</bundles_post_ra>
